<compile_context>
chip_gen: v6e
topology: v6e:2x2x1
jax: 0.10.0
libtpu: 0.0.40
codegen_flags: <defaults>
</compile_context>

<pallas_src>
import functools

import jax
import jax.numpy as jnp
from jax import lax
from jax.experimental import pallas as pl
from jax.experimental.pallas import tpu as pltpu


def _round_up(x: int, m: int) -> int:
    return ((x + m - 1) // m) * m


def _dtype_fills(dtype):
    if jnp.issubdtype(dtype, jnp.floating):
        return float("inf"), float("-inf")
    info = jnp.iinfo(dtype)
    return int(info.max), int(info.min)


def _per_buffer_budget() -> int:
    """Per-input-buffer VMEM budget (input is double-buffered by the pipeline)."""
    try:
        cap = int(pltpu.get_tpu_info().vmem_capacity_bytes)
    except Exception:
        return 7 * 1024 * 1024
    if cap <= 64 * 1024 * 1024:          # v7x-class: 64 MiB VMEM, ~3.2 TB/s HBM
        return 12 * 1024 * 1024          #   -> fewer, larger grid steps
    return 7 * 1024 * 1024               # v5e / v6e (128 MiB physical VMEM)


# ----------------------------------------------------------------------------
# Kernels
# ----------------------------------------------------------------------------
def _all_poolings_batched_kernel(x_ref, o_ref, *, true_n: int):
    # x_ref: (TB, N, L) input block; o_ref: (TB, 5, L).  Single pass, no grid
    # reduction axis, no scratch.
    x = x_ref[...]
    row0 = x[:, 0, :].astype(o_ref.dtype)
    o_ref[:, 0, :] = row0                                     # first
    o_ref[:, 1, :] = row0                                     # "last" (quirk)
    o_ref[:, 2, :] = jnp.min(x, axis=1).astype(o_ref.dtype)   # min
    o_ref[:, 3, :] = jnp.max(x, axis=1).astype(o_ref.dtype)   # max
    s = jnp.sum(x, axis=1, dtype=jnp.float32)                 # f32 accumulate
    o_ref[:, 4, :] = (s * jnp.float32(1.0 / true_n)).astype(o_ref.dtype)


def _all_poolings_reduce_kernel(x_ref, o_ref, mn_ref, mx_ref, sm_ref, *,
                                true_n: int, tile_n: int, ragged: bool):
    # x_ref : (TN, TL) input tile (batch dim squeezed by the BlockSpec).
    # o_ref : (5, TL) output tile; rows = [first, last, min, max, mean];
    #         resident across the innermost (num_seq) grid axis.
    # mn/mx : (1, TL) running min/max in the INPUT dtype.
    # sm    : (1, TL) running sum in f32.
    n_idx = pl.program_id(2)
    n_last = pl.num_programs(2) - 1
    pos_fill, neg_fill = _dtype_fills(x_ref.dtype)

    @pl.when(n_idx == 0)
    def _init():
        mn_ref[...] = jnp.full(mn_ref.shape, pos_fill, mn_ref.dtype)
        mx_ref[...] = jnp.full(mx_ref.shape, neg_fill, mx_ref.dtype)
        sm_ref[...] = jnp.zeros(sm_ref.shape, sm_ref.dtype)
        row0 = x_ref[0:1, :].astype(o_ref.dtype)              # (1, TL)
        o_ref[0:1, :] = row0                                   # first
        o_ref[1:2, :] = row0                                   # "last" (quirk)

    x = x_ref[...]                                             # (TN, TL)

    def _accum(x_min, x_max, x_sum):
        mn_ref[...] = jnp.minimum(mn_ref[...],
                                  jnp.min(x_min, axis=0, keepdims=True))
        mx_ref[...] = jnp.maximum(mx_ref[...],
                                  jnp.max(x_max, axis=0, keepdims=True))
        sm_ref[...] = sm_ref[...] + jnp.sum(x_sum, axis=0, keepdims=True,
                                            dtype=jnp.float32)

    if ragged:
        # Only the final N tile contains out-of-range rows; keep the masking
        # (iota + select) out of the hot loop entirely.
        rem = true_n % tile_n

        @pl.when(n_idx == n_last)
        def _tail():
            valid = lax.broadcasted_iota(jnp.int32, x.shape, 0) < rem
            _accum(jnp.where(valid, x, pos_fill),
                   jnp.where(valid, x, neg_fill),
                   jnp.where(valid, x, jnp.zeros_like(x)))

        @pl.when(n_idx != n_last)
        def _body():
            _accum(x, x, x)
    else:
        _accum(x, x, x)

    @pl.when(n_idx == n_last)
    def _finalize():
        o_ref[2:3, :] = mn_ref[...].astype(o_ref.dtype)
        o_ref[3:4, :] = mx_ref[...].astype(o_ref.dtype)
        o_ref[4:5, :] = (sm_ref[...] * jnp.float32(1.0 / true_n)
                         ).astype(o_ref.dtype)


# ----------------------------------------------------------------------------
# Wrapper
# ----------------------------------------------------------------------------
def _plan(B, N, L, itemsize, budget):
    """Choose ('batched', TB, _, _) or ('reduce', _, TL, TN)."""
    full_bytes = N * L * itemsize
    if full_bytes <= budget:
        tb = max(1, budget // full_bytes)
        if B >= 2:
            tb = min(tb, -(-B // 2))      # keep >= 2 parallel blocks (dual TC)
        tb = min(tb, B)
        return ("batched", tb, None, None)

    if 8 * L * itemsize <= budget:
        tl = L                            # full-L rows -> contiguous DMAs
        if B == 1 and L >= 256:
            # Guarantee >= 2 parallel blocks so both v7x TensorCores get work.
            tl = _round_up(-(-L // 2), 128)
    else:
        tl = max(128, (budget // (8 * itemsize)) // 128 * 128)
        tl = min(tl, _round_up(L, 128))

    tn = (budget // (tl * itemsize)) // 8 * 8
    tn = max(8, tn)
    if tn >= N:
        tn = N                            # full-N block (no ragged tail)
    return ("reduce", None, tl, tn)


def all_poolings(hidden_state: jax.Array, dim: int = 1, *,
                 max_block_bytes: int | None = None) -> jax.Array:
    """JAX/Pallas equivalent of AllPoolings(dim=1).forward.

    hidden_state: (batch_size, num_seq, seq_len).  Returns
    (batch_size, 5, seq_len) = stack([first, last, min, max, mean], dim=1).
    """
    assert hidden_state.ndim == 3, (
        "hidden state size should be (batch_size x num_seq x seq_len)")
    assert dim == 1, "only dim=1 (the reference default) is supported"

    B, N, L = hidden_state.shape
    dtype = hidden_state.dtype
    itemsize = int(jnp.dtype(dtype).itemsize)
    budget = max_block_bytes if max_block_bytes is not None else _per_buffer_budget()

    kind, tb, tl, tn = _plan(B, N, L, itemsize, budget)
    out_shape = jax.ShapeDtypeStruct((B, 5, L), dtype)

    if kind == "batched":
        grid = (pl.cdiv(B, tb),)
        in_bytes = tb * N * L * itemsize
        out_bytes = tb * 5 * L * itemsize
        scratch_bytes = 0
        kernel = functools.partial(_all_poolings_batched_kernel, true_n=N)
        grid_spec = pltpu.PrefetchScalarGridSpec(
            num_scalar_prefetch=0,
            grid=grid,
            # Last two block dims equal the full array dims -> (8,128) rule OK,
            # no padding needed even for odd N / L.
            in_specs=[pl.BlockSpec((tb, N, L), lambda b: (b, 0, 0))],
            out_specs=pl.BlockSpec((tb, 5, L), lambda b: (b, 0, 0)),
        )
        dim_sem = ("parallel",)
    else:
        ragged = (tn < N) and (N % tn != 0)
        grid = (B, pl.cdiv(L, tl), pl.cdiv(N, tn))
        in_bytes = tn * tl * itemsize
        out_bytes = 5 * tl * itemsize
        scratch_bytes = 2 * tl * itemsize + 4 * tl
        kernel = functools.partial(_all_poolings_reduce_kernel,
                                   true_n=N, tile_n=tn, ragged=ragged)
        grid_spec = pltpu.PrefetchScalarGridSpec(
            num_scalar_prefetch=0,
            grid=grid,
            # tn is a multiple of 8 (or == N); tl is a multiple of 128 (or == L).
            in_specs=[pl.BlockSpec((None, tn, tl), lambda b, l, n: (b, n, l))],
            # Output block resident across the reduction (n) axis.
            out_specs=pl.BlockSpec((None, 5, tl), lambda b, l, n: (b, 0, l)),
            scratch_shapes=[
                pltpu.VMEM((1, tl), dtype),        # running min (input dtype)
                pltpu.VMEM((1, tl), dtype),        # running max (input dtype)
                pltpu.VMEM((1, tl), jnp.float32),  # running sum (f32)
            ],
        )
        dim_sem = ("parallel", "parallel", "arbitrary")

    # Explicit VMEM limit derived from actual block sizes (double-buffered I/O)
    # so the v5e 16 MiB scoped default never blocks compilation; capped well
    # under v7x's 64 MiB physical VMEM.
    vmem_limit = 2 * (in_bytes + out_bytes) + scratch_bytes + 4 * 1024 * 1024
    vmem_limit = max(16 * 1024 * 1024, min(vmem_limit, 56 * 1024 * 1024))

    return pl.pallas_call(
        kernel,
        out_shape=out_shape,
        grid_spec=grid_spec,
        compiler_params=pltpu.CompilerParams(
            dimension_semantics=dim_sem,
            vmem_limit_bytes=int(vmem_limit),
        ),
        cost_estimate=pl.CostEstimate(
            flops=3 * B * N * L,
            transcendentals=0,
            bytes_accessed=B * N * L * itemsize + B * 5 * L * itemsize,
        ),
    )(hidden_state)


# ----------------------------------------------------------------------------
# Reference + self-test
# ----------------------------------------------------------------------------
def _reference(x: jax.Array, dim: int = 1) -> jax.Array:
    # Mirrors AllPoolings.forward literally (last_pooling receives lengths=dim).
    b = x.shape[0]
    first = x[:, 0, :]
    last = x[jnp.arange(b), dim - 1, :]
    mn = jnp.min(x, axis=1)
    mx = jnp.max(x, axis=1)
    av = jnp.mean(x, axis=1)
    return jnp.stack([first, last, mn, mx, av], axis=1)


if __name__ == "__main__":
    key = jax.random.PRNGKey(0)

    # Small shape consistent with the module: (batch, num_seq, seq_len).
    # Exercises the batched fast path.
    B, N, L = 2, 8, 32
    x = jax.random.normal(key, (B, N, L), dtype=jnp.float32)
    out = jax.block_until_ready(all_poolings(x))
    ref = _reference(x)
    assert out.shape == (B, 5, L), out.shape
    assert jnp.allclose(out, ref, atol=1e-5, rtol=1e-5)

    # Force the N-reduction grid path: full-L blocks + ragged last N tile.
    x2 = jax.random.normal(jax.random.PRNGKey(0), (2, 20, 200), dtype=jnp.float32)
    out2 = jax.block_until_ready(all_poolings(x2, max_block_bytes=8 * 200 * 4))
    assert out2.shape == (2, 5, 200), out2.shape
    assert jnp.allclose(out2, _reference(x2), atol=1e-5, rtol=1e-5)

    # Force the L-tiled reduction path: partial lane tiles + ragged N tile.
    x3 = jax.random.normal(jax.random.PRNGKey(1), (2, 20, 300), dtype=jnp.float32)
    out3 = jax.block_until_ready(all_poolings(x3, max_block_bytes=4096))
    assert out3.shape == (2, 5, 300), out3.shape
    assert jnp.allclose(out3, _reference(x3), atol=1e-5, rtol=1e-5)

    print("KERNEL_OK")
</pallas_src>

<mosaic_0001>
module attributes {stable_mosaic.version = 11 : i64} {
  func.func @_all_poolings_batched_kernel(%arg0: i32, %arg1: memref<1x8x32xf32, #tpu.memory_space<vmem>>, %arg2: memref<1x5x32xf32, #tpu.memory_space<vmem>>) attributes {dimension_semantics = [#tpu.dimension_semantics<parallel>], iteration_bounds = array<i64: 2>, scalar_prefetch = 0 : i64, scratch_operands = 0 : i64, tpu.core_type = #tpu.core_type<tc>, window_params = [{transform_indices = @transform_0, window_bounds = array<i64: 1, 8, 32>}, {transform_indices = @transform_1, window_bounds = array<i64: 1, 5, 32>}]} {
    %c0 = arith.constant 0 : index
    %c0_0 = arith.constant 0 : index
    %c0_1 = arith.constant 0 : index
    %0 = vector.load %arg1[%c0, %c0_0, %c0_1] : memref<1x8x32xf32, #tpu.memory_space<vmem>>, vector<1x8x32xf32>
    %1 = vector.extract_strided_slice %0 {offsets = [0, 0, 0], sizes = [1, 1, 32], strides = [1, 1, 1]} : vector<1x8x32xf32> to vector<1x1x32xf32>
    %2 = vector.shape_cast %1 : vector<1x1x32xf32> to vector<1x32xf32>
    %c0_2 = arith.constant 0 : index
    %c0_3 = arith.constant 0 : index
    %c0_4 = arith.constant 0 : index
    %3 = vector.load %arg2[%c0_2, %c0_3, %c0_4] : memref<1x5x32xf32, #tpu.memory_space<vmem>>, vector<1x1x32xf32>
    %4 = vector.shape_cast %3 : vector<1x1x32xf32> to vector<1x32xf32>
    %5 = vector.shape_cast %2 : vector<1x32xf32> to vector<1x1x32xf32>
    tpu.vector_store %arg2[%c0_2, %c0_3, %c0_4], %5 {strides = array<i32>} : memref<1x5x32xf32, #tpu.memory_space<vmem>>, vector<1x1x32xf32>,
    %c0_5 = arith.constant 0 : index
    %c1 = arith.constant 1 : index
    %c0_6 = arith.constant 0 : index
    %6 = vector.load %arg2[%c0_5, %c1, %c0_6] : memref<1x5x32xf32, #tpu.memory_space<vmem>>, vector<1x1x32xf32>
    %7 = vector.shape_cast %6 : vector<1x1x32xf32> to vector<1x32xf32>
    %8 = vector.shape_cast %2 : vector<1x32xf32> to vector<1x1x32xf32>
    tpu.vector_store %arg2[%c0_5, %c1, %c0_6], %8 {strides = array<i32>} : memref<1x5x32xf32, #tpu.memory_space<vmem>>, vector<1x1x32xf32>,
    %cst = arith.constant dense<0x7F800000> : vector<1x32xf32>
    %9 = vector.multi_reduction <minimumf>, %0, %cst [1] : vector<1x8x32xf32> to vector<1x32xf32>
    %c0_7 = arith.constant 0 : index
    %c2 = arith.constant 2 : index
    %c0_8 = arith.constant 0 : index
    %10 = vector.load %arg2[%c0_7, %c2, %c0_8] : memref<1x5x32xf32, #tpu.memory_space<vmem>>, vector<1x1x32xf32>
    %11 = vector.shape_cast %10 : vector<1x1x32xf32> to vector<1x32xf32>
    %12 = vector.shape_cast %9 : vector<1x32xf32> to vector<1x1x32xf32>
    tpu.vector_store %arg2[%c0_7, %c2, %c0_8], %12 {strides = array<i32>} : memref<1x5x32xf32, #tpu.memory_space<vmem>>, vector<1x1x32xf32>,
    %cst_9 = arith.constant dense<0xFF800000> : vector<1x32xf32>
    %13 = vector.multi_reduction <maximumf>, %0, %cst_9 [1] : vector<1x8x32xf32> to vector<1x32xf32>
    %c0_10 = arith.constant 0 : index
    %c3 = arith.constant 3 : index
    %c0_11 = arith.constant 0 : index
    %14 = vector.load %arg2[%c0_10, %c3, %c0_11] : memref<1x5x32xf32, #tpu.memory_space<vmem>>, vector<1x1x32xf32>
    %15 = vector.shape_cast %14 : vector<1x1x32xf32> to vector<1x32xf32>
    %16 = vector.shape_cast %13 : vector<1x32xf32> to vector<1x1x32xf32>
    tpu.vector_store %arg2[%c0_10, %c3, %c0_11], %16 {strides = array<i32>} : memref<1x5x32xf32, #tpu.memory_space<vmem>>, vector<1x1x32xf32>,
    %cst_12 = arith.constant dense<0.000000e+00> : vector<1x32xf32>
    %17 = vector.multi_reduction <add>, %0, %cst_12 [1] : vector<1x8x32xf32> to vector<1x32xf32>
    %cst_13 = arith.constant 1.250000e-01 : f32
    %18 = vector.broadcast %cst_13 : f32 to vector<1x32xf32>
    %19 = arith.mulf %17, %18 : vector<1x32xf32>
    %c0_14 = arith.constant 0 : index
    %c4 = arith.constant 4 : index
    %c0_15 = arith.constant 0 : index
    %20 = vector.load %arg2[%c0_14, %c4, %c0_15] : memref<1x5x32xf32, #tpu.memory_space<vmem>>, vector<1x1x32xf32>
    %21 = vector.shape_cast %20 : vector<1x1x32xf32> to vector<1x32xf32>
    %22 = vector.shape_cast %19 : vector<1x32xf32> to vector<1x1x32xf32>
    tpu.vector_store %arg2[%c0_14, %c4, %c0_15], %22 {strides = array<i32>} : memref<1x5x32xf32, #tpu.memory_space<vmem>>, vector<1x1x32xf32>,
    return
  }
  func.func @transform_0(%arg0: i32) -> (i32, i32, i32) {
    %c0_i32 = arith.constant 0 : i32
    %c0_i32_0 = arith.constant 0 : i32
    %c0_i32_1 = arith.constant 0 : i32
    return %arg0, %c0_i32, %c0_i32_0 : i32, i32, i32
  }
  func.func @transform_1(%arg0: i32) -> (i32, i32, i32) {
    %c0_i32 = arith.constant 0 : i32
    %c0_i32_0 = arith.constant 0 : i32
    %c0_i32_1 = arith.constant 0 : i32
    return %arg0, %c0_i32, %c0_i32_0 : i32, i32, i32
  }
}

</mosaic_0001>

<bundles_post_ra>
// kernel: tpu_custom_call.1
= control target key start
LH: loop header
LB: loop body
LE: loop exit
PB: predicated region body
PF: predicated region fallthrough
CT: control target
= control target key end

     0   :  { %6 = vsyncpa [#allocation3], 0  ;;  %s456_s0 = inlined_call_operand.hbm [shape: f32[2,8,32], index: 0, kind: input, shape index: {}]   ;;  %s457_s1 = inlined_call_operand.vmem [shape: f32[2,5,32], index: 1, kind: output, shape index: {}]  }
   0x1   :  { %8 = vsyncpa [#allocation3 + $0x1], 0  ;;  %s351_s6 = smov 0   ;;  %s353_s7 = smov 0  }
   0x2   :  { %s355_s8 = smov 0   ;;  %s357_s9 = smov 0  }
   0x3 LB: > { %s370_s10 = sadd.s32 4294967295, %s338_s9   ;;  %s373_s11 = sadd.s32 1, %s338_s9   ;;  %s338_s9 = sphi %s357_s9, %s467_s9   ;;  %s334_s8 = sphi %s355_s8, %s466_s8   ;;  %s330_s7 = sphi %s353_s7, %s465_s7   ;;  %s326_s6 = sphi %s351_s6, %s464_s6  }
   0x4   : > { %s18_s12 = ssub.s32 %s338_s9, %s373_s11  ;;  %s21_s13 = sadd.s32 1, %s334_s8 }
   0x5   : > { %p19_p0 = scmp.eq.s32.totalorder %s18_s12, 0  ;;  %p28_p1 = scmp.ne.s32.totalorder %s334_s8, %s330_s7 }
   0x6   : > { %p29_p2 = scmp.eq.s32.totalorder %s338_s9, 0  ;;  %p34_p3 = scmp.ne.s32.totalorder %s330_s7, %s326_s6 }
   0x7   : > { %s383_s14 = scalar_select %p19_p0, %s334_s8, %s21_s13  }
   0x8   : > { %p30_p4 = por %p29_p2, %p28_p1  ;;  %p35_p5 = scmp.eq.s32.totalorder %s370_s10, 0 }
   0x9   : > { %p243_p6 = scmp.lt.s32.totalorder %s338_s9, 2  ;;  %s84_s16 = sand.u32 1, %s334_s8  }
   0xa   : > { %p387_p7 = por %p35_p5, %p34_p3  ;;  %s230_s17 = sshll.u32 %s84_s16, 3 }
   0xb   : > { %s231_s18 = sshll.u32 %s338_s9, 7  ;;  %s88_s22 = scalar_lea.vmem [#allocation2], %s230_s17 }
   0xc   : > { %s459_s15 = scalar_select %p387_p7, 1, 0 }
   0xd   : > { %s396_s21 = scalar_lea.hbm %s456_s0, %s231_s18  ;;  %s95_s23 = sshll.u32 %s88_s22, 4  ;;  %s398_s23 = int_to_ptr.vmem [resolvable:$true] %s95_s23 }
   0xe   : > { %p400_p8 = pnand %p243_p6, %p30_p4  ;;  %s85_s25 = scalar_lea.sflag [#allocation3], %s84_s16 }
   0xf   : > { %s276_s26 = scalar_lea.hbm %s396_s21, 128  ;;  %s281_s29 = scalar_lea.hbm %s456_s0, 256 }
  0x10   : > { %p277_p11 = scmp.ne.s32.totalorder %s396_s21, %s276_s26  ;;  %p278_p12 = pneg %p400_p8 }
  0x11   : > { %p282_p1 = scmp.lt.s32.totalorder %s396_s21, %s456_s0  ;;  %p283_p2 = scmp.lt.s32.totalorder %s281_s29, %s276_s26 }
  0x12   : > { %p279_p13 = pnand %p278_p12, %p277_p11 }
  0x13   : > { %p284_p3 = por %p283_p2, %p282_p1 }
  0x14   : > { %p280_p0 = pneg %p279_p13 }
  0x16   : > { %p285_p4 = pnand %p284_p3, %p280_p0 }
  0x18   : > { %288 = shalt.err (!%p285_p4)
}
  0x19   : > { %s289_s3 = scalar_lea.vmem %s398_s23, 128  ;;  %s340_s4 = smov [#allocation2]  }
  0x1a   : > { %p290_p5 = scmp.ne.s32.totalorder %s398_s23, %s289_s3  ;;  %s294_s5 = sshll.u32 %s340_s4, 4  ;;  %s295_s5 = int_to_ptr.vmem [resolvable:$false] %s294_s5 }
  0x1b   : > { %s296_s6 = scalar_lea.vmem %s295_s5, 256  ;;  %p297_p13 = scmp.lt.s32.totalorder %s398_s23, %s295_s5 }
  0x1c   : > { %p292_p6 = pnand %p290_p5, %p278_p12  ;;  %p298_p9 = scmp.lt.s32.totalorder %s296_s6, %s289_s3 }
  0x1e   : > { %p293_p11 = pneg %p292_p6  ;;  %p299_p10 = por %p298_p9, %p297_p13 }
  0x20   : > { %p300_p7 = pnand %p299_p10, %p293_p11 }
  0x22   : > { %303 = shalt.err (!%p300_p7)
}
  0x23   : > { %242 = dma.hbm_to_vmem [thread:$0]  (!%p400_p8), %s396_s21, 128, %s398_s23, %s85_s25  }
  0x24   : > { %p461_p0 = scmp.lt.s32.totalorder %s338_s9, 3  ;;  %p462_p1 = scmp.ge.s32.totalorder %s338_s9, 1 }
  0x26   : > { %p101_p12 = pnand %p462_p1, %p461_p0 }
  0x27   : > { %s106_s12 = sand.u32 (!%p101_p12), 1, %s330_s7   ;;  %p463_p9 = scmp.ne.s32.totalorder (!%p101_p12), %s459_s15, 0 }
  0x28   : > { %104 = sbr.rel (%p101_p12) target bundleno = 63 (0x3f), region = 24  ;;  %s233_s13 = sshll.u32 (!%p101_p12), %s106_s12, 3 }
  0x29   : > { %s107_s16 = scalar_lea.sflag (!%p101_p12), [#allocation3], %s106_s12  ;;  %s110_s17 = scalar_lea.vmem (!%p101_p12), [#allocation2], %s233_s13 }
  0x2d   : > { %321 = dma.done.wait (%p463_p9), %s107_s16, 128  }
  0x2e   : > { %323 = vsyncadd (%p463_p9), %s107_s16, 4294967168  ;;  %p128_p7 = scmp.lt.s32.totalorder %s370_s10, 1  ;;  %vm133_vm0 = vcmask 253952   ;;  %vm136_vm1 = vcmask 261120   ;;  %v132_v0 = vld [vmem:[%s110_s17] sm:$0xff] }
  0x2f   : > { %v137_v1 = vsel %vm136_vm1, %v132_v0, inf  ;;  %v145_v2 = vsel %vm136_vm1, %v132_v0, -inf  ;;  %v153_v3 = vsel %vm136_vm1, %v132_v0, 0.0 }
  0x30   : > { %s469_s10 = smov (!%p128_p7, %s370_s10), 1  ;;  %v138_v4 = vrot.slane %v137_v1, 4  ;;  %v146_v5 = vrot.slane %v145_v2, 4  ;;  %v154_v6 = vrot.slane %v153_v3, 4 }
  0x31   : > { %s234_s18 = sshll.u32 %s469_s10, 3 }
  0x32   : > { %s131_s20 = scalar_lea.vmem %s457_s1, %s234_s18  ;;  %v139_v7 = vmin.f32 %v137_v1, %v138_v4  ;;  %v147_v8 = vmax.f32 %v145_v2, %v146_v5  ;;  %v155_v9 = vadd.f32 %v154_v6, %v153_v3 }
  0x33   : > { %134 = vst.msk [vmem:[%s131_s20] sm:$0x1] %vm133_vm0, %v132_v0  ;;  %135 = vst.msk [vmem:[%s131_s20 + $0x1] sm:$0x1] %vm133_vm0, %v132_v0 }
  0x34   : > { %v140_v10 = vrot.slane %v139_v7, 2  ;;  %v148_v11 = vrot.slane %v147_v8, 2  ;;  %v156_v12 = vrot.slane %v155_v9, 2 }
  0x36   : > { %v141_v13 = vmin.f32 %v139_v7, %v140_v10  ;;  %v149_v14 = vmax.f32 %v147_v8, %v148_v11  ;;  %v157_v15 = vadd.f32 %v156_v12, %v155_v9 }
  0x38   : > { %v142_v16 = vrot.slane %v141_v13, 1  ;;  %v150_v17 = vrot.slane %v149_v14, 1  ;;  %v158_v18 = vrot.slane %v157_v15, 1 }
  0x3a   : > { %v143_v19 = vmin.f32 %v141_v13, %v142_v16  ;;  %v151_v20 = vmax.f32 %v149_v14, %v150_v17  ;;  %v159_v21 = vadd.f32 %v158_v18, %v157_v15 }
  0x3c   : > { %144 = vst.msk [vmem:[%s131_s20 + $0x2] sm:$0x1] %vm133_vm0, %v143_v19  ;;  %152 = vst.msk [vmem:[%s131_s20 + $0x3] sm:$0x1] %vm133_vm0, %v151_v20  ;;  %v160_v22 = vmul.f32 0.125, %v159_v21 }
  0x3e   : > { %161 = vst.msk [vmem:[%s131_s20 + $0x4] sm:$0x1] %vm133_vm0, %v160_v22 }
  0x3f PF: > { %p11_p8 = scmp.ge.s32.totalorder %s373_s11, 4   ;;  %s464_s6 = smov %s330_s7 }
  0x40   : > { %s465_s7 = smov %s334_s8  ;;  %s466_s8 = smov %s383_s14 }
  0x41   : > { %s467_s9 = smov %s373_s11  ;;  %13 = sbr.rel (!%p11_p8) target bundleno = 3 (0x3), region = 64 }
  0x46   :  { %181 = vsyncpa [#allocation3], 1 }
  0x47   :  { %183 = vsyncpa [#allocation3 + $0x1], 1 }

</bundles_post_ra>
